<compile_context>
chip_gen: v7x
topology: tpu7x:2x2x1
jax: 0.10.0
libtpu: 0.0.40
codegen_flags: <defaults>
</compile_context>

<pallas_src>
import functools

import jax
import jax.numpy as jnp
from jax.experimental import pallas as pl
from jax.experimental.pallas import tpu as pltpu

_EPS = 1e-6                    # torch.nn.functional.pairwise_distance default eps
_MIB = 1024 * 1024
_TARGET_STEP_IN_BYTES = 4 * _MIB   # ~4 MiB of streamed input per grid step


def _round_up(x: int, m: int) -> int:
    return (x + m - 1) // m * m


def _triplet_loss_kernel(*refs, margin, rows, tile_b, groups, ragged):
    """One grid step: (3, TB, Dk) stacked tile -> one scalar partial loss sum."""
    if groups > 1:
        apn_ref, sel_ref, o_ref = refs
    else:
        apn_ref, o_ref = refs
        sel_ref = None

    # Compute in f32 regardless of storage dtype (bf16 is only a DMA format here).
    a = apn_ref[0].astype(jnp.float32)
    p = apn_ref[1].astype(jnp.float32)
    n = apn_ref[2].astype(jnp.float32)

    dpv = a - p + _EPS
    dnv = a - n + _EPS

    if groups == 1:
        # Row-wise sum of squares (cross-lane reduce on the XLU).
        ss_p = jnp.sum(dpv * dpv, axis=-1, keepdims=True)          # (TB, 1)
        ss_n = jnp.sum(dnv * dnv, axis=-1, keepdims=True)
    else:
        # Lane-dense small-D path: each kernel row packs `groups` original rows.
        # The grouped sum-of-squares is a matmul with a 0/1 block selector, which
        # runs on the otherwise idle MXU (HIGHEST precision keeps f32 accuracy).
        sel = sel_ref[...]                                          # (Dk, groups)
        ss_p = jnp.dot(dpv * dpv, sel, preferred_element_type=jnp.float32,
                       precision=jax.lax.Precision.HIGHEST)         # (TB, groups)
        ss_n = jnp.dot(dnv * dnv, sel, preferred_element_type=jnp.float32,
                       precision=jax.lax.Precision.HIGHEST)

    # sqrt sits on the EUP slot, essentially free in this HBM-bound kernel.
    losses = jnp.maximum(jnp.sqrt(ss_p) - jnp.sqrt(ss_n) + margin, 0.0)

    if not ragged:
        o_ref[0, 0] = jnp.sum(losses)
    else:
        i = pl.program_id(0)
        last = pl.num_programs(0) - 1

        @pl.when(i != last)
        def _():
            o_ref[0, 0] = jnp.sum(losses)

        @pl.when(i == last)
        def _():
            # Padded rows of the ragged last tile hold garbage; jnp.where is a
            # select so NaN/Inf produced from them never reaches the partial sum.
            r = i * tile_b + jax.lax.broadcasted_iota(jnp.int32, losses.shape, 0)
            o_ref[0, 0] = jnp.sum(jnp.where(r < rows, losses, 0.0))


def _pick_vmem_budgets():
    """(vmem_limit_bytes, working_set_budget, multi_core) per TPU generation."""
    try:
        vmem_cap = int(pltpu.get_tpu_info().vmem_capacity_bytes)
    except Exception:
        vmem_cap = 64 * _MIB                       # assume the tightest (v7x-like)
    if vmem_cap <= 96 * _MIB:                      # v7x-class: 64 MiB per TC, 2 TCs
        return 44 * _MIB, 28 * _MIB, True
    return 80 * _MIB, 56 * _MIB, False             # v5e / v6e: 128 MiB, single TC


def triplet_loss(outputs, labels=None, *, margin: float = 1.0, tile_rows=None):
    """outputs: (3, B, D) stacked (anchor, positive, negative). labels unused."""
    outputs = jnp.asarray(outputs)
    if outputs.ndim != 3 or outputs.shape[0] != 3:
        raise ValueError(
            "This is the Triplet Loss but more (or less) than 3 tensors were unpacked")
    _, B, D = outputs.shape
    itemsize = jnp.dtype(outputs.dtype).itemsize
    sub = 8 * (4 // itemsize)      # sublane packing: 8 (f32), 16 (bf16), 32 (int8/fp8)

    # --- Lane densification for small D: fold g rows into one 128-wide lane row.
    g = 1
    if D < 128 and 128 % D == 0 and B % (128 // D) == 0:
        g = 128 // D
    Bk, Dk = B // g, g * D

    vmem_limit, ws_budget, multi_core = _pick_vmem_budgets()

    # --- Batch-tile size: ~4 MiB of streamed input per grid step, capped by the
    # VMEM working set (double-buffered inputs + f32 temporaries a/p/n, dpv/dnv).
    per_row_in = 3 * Dk * itemsize
    per_row_ws = 2 * per_row_in + 5 * Dk * 4
    tb = min(max(sub, _TARGET_STEP_IN_BYTES // per_row_in // sub * sub),
             max(sub, ws_budget // per_row_ws // sub * sub))
    if tile_rows is not None:                      # explicit override (tests/tuning)
        tb = max(1, int(tile_rows))
        if tb < Bk:
            tb = _round_up(tb, sub)
    if Bk <= tb:
        tb = Bk                                    # single full-extent tile
    elif tb % sub:
        tb = _round_up(tb, sub)
    if multi_core and Bk > 2 * sub and pl.cdiv(Bk, tb) < 2:
        tb = _round_up(pl.cdiv(Bk, 2), sub)        # give both v7x TensorCores work
    num_tiles = pl.cdiv(Bk, tb)
    ragged = (Bk % tb) != 0
    # TODO(synk): add a D-tiled (2-D grid, f32 scratch accumulator) fallback for
    # very large D where even an 8-row batch tile exceeds the VMEM budget.

    apn = outputs.reshape(3, Bk, Dk) if g > 1 else outputs

    kernel = functools.partial(_triplet_loss_kernel, margin=float(margin),
                               rows=Bk, tile_b=tb, groups=g, ragged=ragged)

    in_specs = [pl.BlockSpec((3, tb, Dk), lambda i: (0, i, 0))]
    args = [apn]
    if g > 1:
        # 0/1 group selector (Dk, g); constant block index -> DMA'd once, resident.
        sel = (jnp.arange(Dk, dtype=jnp.int32)[:, None] // D
               == jnp.arange(g, dtype=jnp.int32)[None, :]).astype(jnp.float32)
        in_specs.append(pl.BlockSpec((Dk, g), lambda i: (0, 0)))
        args.append(sel)

    cost = pl.CostEstimate(
        flops=int(10 * B * D + 4 * B * Dk),
        transcendentals=int(2 * B),
        bytes_accessed=int(3 * B * D * itemsize + Dk * g * 4 + 4 * num_tiles))

    partials = pl.pallas_call(
        kernel,
        out_shape=jax.ShapeDtypeStruct((num_tiles, 1), jnp.float32),
        grid=(num_tiles,),
        in_specs=in_specs,
        out_specs=pl.BlockSpec((1, 1), lambda i: (i, 0),
                               memory_space=pltpu.MemorySpace.SMEM),
        compiler_params=pltpu.CompilerParams(
            dimension_semantics=("parallel",),
            vmem_limit_bytes=vmem_limit),
        cost_estimate=cost,
    )(*args)

    # Tiny final reduction in the wrapper keeps the grid axis fully parallel.
    return jnp.sum(partials) / B


def _reference(outputs, margin):
    o = jnp.asarray(outputs).astype(jnp.float32)
    a, p, n = o[0], o[1], o[2]
    dp = jnp.sqrt(jnp.sum((a - p + _EPS) ** 2, axis=-1))
    dn = jnp.sqrt(jnp.sum((a - n + _EPS) ** 2, axis=-1))
    return jnp.mean(jnp.maximum(dp - dn + margin, 0.0))


if __name__ == "__main__":
    key = jax.random.PRNGKey(0)
    k1, k2, k3, k4 = jax.random.split(key, 4)
    margin = 1.0

    # Case 1: canonical small shape (B=8, D=32) -> lane-dense grouped path, 1 tile.
    out1 = jax.random.normal(k1, (3, 8, 32), dtype=jnp.float32)
    lbl1 = jax.random.randint(k2, (8,), 0, 10)     # unused, signature parity
    l1 = jax.block_until_ready(triplet_loss(out1, lbl1, margin=margin))
    r1 = _reference(out1, margin)
    assert jnp.allclose(l1, r1, rtol=1e-4, atol=1e-4), (l1, r1)

    # Case 2: grouped + multi-tile + ragged last tile (B=80, D=32, 8-row tiles).
    out2 = jax.random.normal(k3, (3, 80, 32), dtype=jnp.float32)
    l2 = jax.block_until_ready(triplet_loss(out2, None, margin=margin, tile_rows=8))
    r2 = _reference(out2, margin)
    assert jnp.allclose(l2, r2, rtol=1e-4, atol=1e-4), (l2, r2)

    # Case 3: ungrouped path with bf16 storage (B=24, D=128), single full tile.
    out3 = jax.random.normal(k4, (3, 24, 128), dtype=jnp.float32).astype(jnp.bfloat16)
    l3 = jax.block_until_ready(triplet_loss(out3, None, margin=margin))
    r3 = _reference(out3, margin)
    assert jnp.allclose(l3, r3, rtol=1e-4, atol=1e-4), (l3, r3)

    print("KERNEL_OK")
</pallas_src>

<mosaic_0001>
module attributes {stable_mosaic.version = 11 : i64} {
  func.func @_triplet_loss_kernel(%arg0: i32, %arg1: memref<3x2x128xf32, #tpu.memory_space<vmem>>, %arg2: memref<128x4xf32, #tpu.memory_space<vmem>>, %arg3: memref<1x1xf32, #tpu.memory_space<smem>>) attributes {dimension_semantics = [#tpu.dimension_semantics<parallel>], iteration_bounds = array<i64: 1>, scalar_prefetch = 0 : i64, scratch_operands = 0 : i64, tpu.core_type = #tpu.core_type<tc>, window_params = [{transform_indices = @transform_0, window_bounds = array<i64: 3, 2, 128>}, {pipeline_mode = #tpu.pipeline_mode<synchronous>, transform_indices = @transform_1, window_bounds = array<i64: 128, 4>}, {transform_indices = @transform_2, window_bounds = array<i64: 1, 1>}]} {
    %c0 = arith.constant 0 : index
    %c0_0 = arith.constant 0 : index
    %c0_1 = arith.constant 0 : index
    %0 = vector.load %arg1[%c0, %c0_0, %c0_1] : memref<3x2x128xf32, #tpu.memory_space<vmem>>, vector<1x2x128xf32>
    %1 = vector.shape_cast %0 : vector<1x2x128xf32> to vector<2x128xf32>
    %c1 = arith.constant 1 : index
    %c0_2 = arith.constant 0 : index
    %c0_3 = arith.constant 0 : index
    %2 = vector.load %arg1[%c1, %c0_2, %c0_3] : memref<3x2x128xf32, #tpu.memory_space<vmem>>, vector<1x2x128xf32>
    %3 = vector.shape_cast %2 : vector<1x2x128xf32> to vector<2x128xf32>
    %c2 = arith.constant 2 : index
    %c0_4 = arith.constant 0 : index
    %c0_5 = arith.constant 0 : index
    %4 = vector.load %arg1[%c2, %c0_4, %c0_5] : memref<3x2x128xf32, #tpu.memory_space<vmem>>, vector<1x2x128xf32>
    %5 = vector.shape_cast %4 : vector<1x2x128xf32> to vector<2x128xf32>
    %6 = arith.subf %1, %3 : vector<2x128xf32>
    %cst = arith.constant 9.99999997E-7 : f32
    %7 = vector.broadcast %cst : f32 to vector<2x128xf32>
    %8 = arith.addf %6, %7 : vector<2x128xf32>
    %9 = arith.subf %1, %5 : vector<2x128xf32>
    %cst_6 = arith.constant 9.99999997E-7 : f32
    %10 = vector.broadcast %cst_6 : f32 to vector<2x128xf32>
    %11 = arith.addf %9, %10 : vector<2x128xf32>
    %c0_7 = arith.constant 0 : index
    %c0_8 = arith.constant 0 : index
    %12 = vector.load %arg2[%c0_7, %c0_8] : memref<128x4xf32, #tpu.memory_space<vmem>>, vector<128x4xf32>
    %13 = arith.mulf %8, %8 : vector<2x128xf32>
    %cst_9 = arith.constant dense<0.000000e+00> : vector<2x4xf32>
    %14 = tpu.matmul %13, %12, %cst_9 {dimension_numbers = #tpu.dot_dimension_numbers<[1], [0], [0], [1], [0, 0, 1, 1], [], []>, precision = #tpu.contract_precision<fp32>} : vector<2x128xf32>, vector<128x4xf32>, vector<2x4xf32> -> vector<2x4xf32>
    %15 = arith.mulf %11, %11 : vector<2x128xf32>
    %cst_10 = arith.constant dense<0.000000e+00> : vector<2x4xf32>
    %16 = tpu.matmul %15, %12, %cst_10 {dimension_numbers = #tpu.dot_dimension_numbers<[1], [0], [0], [1], [0, 0, 1, 1], [], []>, precision = #tpu.contract_precision<fp32>} : vector<2x128xf32>, vector<128x4xf32>, vector<2x4xf32> -> vector<2x4xf32>
    %17 = math.sqrt %14 : vector<2x4xf32>
    %18 = math.sqrt %16 : vector<2x4xf32>
    %19 = arith.subf %17, %18 : vector<2x4xf32>
    %cst_11 = arith.constant 1.000000e+00 : f32
    %20 = vector.broadcast %cst_11 : f32 to vector<2x4xf32>
    %21 = arith.addf %19, %20 : vector<2x4xf32>
    %cst_12 = arith.constant 0.000000e+00 : f32
    %22 = vector.broadcast %cst_12 : f32 to vector<2x4xf32>
    %23 = arith.maximumf %21, %22 : vector<2x4xf32>
    %24 = vector.shape_cast %23 : vector<2x4xf32> to vector<1x2x4xf32>
    %cst_13 = arith.constant dense<0.000000e+00> : vector<1xf32>
    %25 = vector.multi_reduction <add>, %24, %cst_13 [1, 2] : vector<1x2x4xf32> to vector<1xf32>
    %26 = vector.shape_cast %25 : vector<1xf32> to vector<1x1x1xf32>
    %27 = vector.extract %26[0, 0, 0] : f32 from vector<1x1x1xf32>
    %c0_14 = arith.constant 0 : index
    %c0_15 = arith.constant 0 : index
    %28 = memref.load %arg3[%c0_14, %c0_15] : memref<1x1xf32, #tpu.memory_space<smem>>
    memref.store %27, %arg3[%c0_14, %c0_15] : memref<1x1xf32, #tpu.memory_space<smem>>
    return
  }
  func.func @transform_0(%arg0: i32) -> (i32, i32, i32) {
    %c0_i32 = arith.constant 0 : i32
    %c0_i32_0 = arith.constant 0 : i32
    %c0_i32_1 = arith.constant 0 : i32
    return %c0_i32, %arg0, %c0_i32_0 : i32, i32, i32
  }
  func.func @transform_1(%arg0: i32) -> (i32, i32) {
    %c0_i32 = arith.constant 0 : i32
    %c0_i32_0 = arith.constant 0 : i32
    %c0_i32_1 = arith.constant 0 : i32
    return %c0_i32, %c0_i32_0 : i32, i32
  }
  func.func @transform_2(%arg0: i32) -> (i32, i32) {
    %c0_i32 = arith.constant 0 : i32
    %c0_i32_0 = arith.constant 0 : i32
    return %arg0, %c0_i32 : i32, i32
  }
}

</mosaic_0001>

<bundles_post_ra>
// kernel: tpu_custom_call.1
= control target key start
LH: loop header
LB: loop body
LE: loop exit
PB: predicated region body
PF: predicated region fallthrough
CT: control target
= control target key end

     0   :  { %v2320_v3 = vmov 0.0|0.0   ;;  %vm2321_vm0 = vmmov 0   ;;  %v2322_v11 = vmov 0.0   ;;  %s2761_s0 = inlined_call_operand.vmem [shape: f32[3,2,128], index: 0, kind: input, shape index: {}]   ;;  %s2762_s1 = inlined_call_operand.vmem [shape: f32[128,4], index: 1, kind: input, shape index: {}]   ;;  %s2763_s2 = inlined_call_operand.hbm [shape: f32[1,1], index: 2, kind: output, shape index: {}]  }
   0x1   :  { %v21_v0 = vld [vmem:[%s2762_s1] sm:$0xff]  ;;  %v22_v1 = vld [vmem:[%s2762_s1 + $0x8] sm:$0xff]  ;;  %v23_v2 = vld [vmem:[%s2762_s1 + $0x10] sm:$0xff]  ;;  %1990 = vmatprep.subr.bf16.mxu0 %v2320_v3  ;;  %2134 = vmatprep.subr.bf16.mxu1 %v2320_v3 }
   0x2   :  { %v39_v4 = vand.u32 4294901760, %v21_v0  ;;  %v42_v5 = vand.u32 4294901760, %v22_v1  ;;  %v2353_v6 = vld [vmem:[%s2762_s1 + $0x18] sm:$0xff]  ;;  %v45_v7 = vand.u32 4294901760, %v23_v2  ;;  %v2359_v9 = vld [vmem:[%s2762_s1 + $0x20] sm:$0xff]  ;;  %v2364_v10 = vld [vmem:[%s2762_s1 + $0x28] sm:$0xff]  ;;  %1602 = vmatprep.mubr.msk.f32.mxu0 %vm2321_vm0, %v2322_v11  ;;  %1812 = vmatprep.mubr.msk.f32.mxu1 %vm2321_vm0, %v2322_v11 }
   0x3   :  { %v48_v8 = vand.u32 4294901760, %v2353_v6  ;;  %v51_v14 = vand.u32 4294901760, %v2359_v9  ;;  %v54_v15 = vand.u32 4294901760, %v2364_v10  ;;  %v2383_v16 = vld [vmem:[%s2762_s1 + $0x30] sm:$0xff]  ;;  %v12_v17 = vld [vmem:[%s2761_s0] sm:$0x3] }
   0x4   :  { %v2370_v12 = vpack.c.bf16 %v42_v5, %v39_v4  ;;  %v2393_v18 = vld [vmem:[%s2762_s1 + $0x38] sm:$0xff]  ;;  %v1364_v19 = vld [vmem:[%s2761_s0 + $0x2] sm:$0x3]  ;;  %v1365_v20 = vld [vmem:[%s2761_s0 + $0x4] sm:$0x3] }
   0x5   :  { %v2376_v13 = vpack.c.bf16 %v48_v8, %v45_v7  ;;  %v17_v21 = vsub.f32 %v12_v17, %v1364_v19 }
   0x6   :  { %1992 = vmatpush3.bf16.msra.mxu0 %v2370_v12  ;;  %2136 = vmatpush3.bf16.msra.mxu1 %v2370_v12 }
   0x7   :  { %1993 = vmatprep.subr.bf16.mxu0 %v2320_v3  ;;  %2137 = vmatprep.subr.bf16.mxu1 %v2320_v3 }
   0x8   :  { %7 = vsyncpa [#allocation3], 0  ;;  %v19_v22 = vsub.f32 %v12_v17, %v1365_v20  ;;  %v2403_v23 = vpack.c.bf16 %v54_v15, %v51_v14  ;;  %v57_v24 = vand.u32 4294901760, %v2383_v16  ;;  %v60_v25 = vand.u32 4294901760, %v2393_v18  ;;  %v29_v26 = vld [vmem:[%s2762_s1 + $0x40] sm:$0xff]  ;;  %v30_v28 = vld [vmem:[%s2762_s1 + $0x48] sm:$0xff] }
   0x9   :  { %v18_v27 = vadd.f32 1e-06, %v17_v21  ;;  %v63_v31 = vand.u32 4294901760, %v29_v26  ;;  %v66_v34 = vand.u32 4294901760, %v30_v28  ;;  %v31_v35 = vld [vmem:[%s2762_s1 + $0x50] sm:$0xff]  ;;  %v32_v36 = vld [vmem:[%s2762_s1 + $0x58] sm:$0xff]  ;;  %v2430_v39 = vsub.f32 %v21_v0, %v39_v4 }
   0xa   :  { %1995 = vmatpush3.bf16.msra.mxu0 %v2376_v13  ;;  %2139 = vmatpush3.bf16.msra.mxu1 %v2376_v13  ;;  %v20_v29 = vadd.f32 1e-06, %v19_v22  ;;  %v2417_v33 = vpack.c.bf16 %v60_v25, %v57_v24  ;;  %v33_v37 = vld [vmem:[%s2762_s1 + $0x60] sm:$0xff]  ;;  %v2434_v40 = vsub.f32 %v22_v1, %v42_v5  ;;  %v34_v42 = vld [vmem:[%s2762_s1 + $0x68] sm:$0xff]  ;;  %v35_v43 = vld [vmem:[%s2762_s1 + $0x70] sm:$0xff]  ;;  %v2447_v45 = vsub.f32 %v23_v2, %v45_v7  ;;  %s2308_s20 = scalar_lea.hbm %s2763_s2, 16 }
   0xb   :  { %1996 = vmatprep.subr.bf16.mxu0 %v2320_v3  ;;  %2140 = vmatprep.subr.bf16.mxu1 %v2320_v3  ;;  %v37_v30 = vmul.f32 %v18_v27, %v18_v27  ;;  %v36_v44 = vld [vmem:[%s2762_s1 + $0x78] sm:$0xff]  ;;  %v69_v46 = vand.u32 4294901760, %v31_v35  ;;  %v72_v47 = vand.u32 4294901760, %v32_v36  ;;  %v75_v48 = vand.u32 4294901760, %v33_v37  ;;  %p2309_p0 = scmp.ne.s32.totalorder %s2763_s2, %s2308_s20  ;;  %p2312_p1 = scmp.lt.u32.totalorder %s2308_s20, %s2763_s2 }
   0xc   :  { %v679_v32 = vmul.f32 %v20_v29, %v20_v29  ;;  %v2451_v49 = vpack.c.bf16 %v66_v34, %v63_v31  ;;  %v132_v51 = vand.u32 4294901760, %v2430_v39  ;;  %v78_v53 = vand.u32 4294901760, %v34_v42 }
   0xd   :  { %v2428_v38 = vand.u32 4294901760, %v37_v30  ;;  %v81_v54 = vand.u32 4294901760, %v35_v43  ;;  %v84_v55 = vand.u32 4294901760, %v36_v44  ;;  %v139_v56 = vand.u32 4294901760, %v2434_v40  ;;  %p2314_p2 = pnand %p2312_p1, %p2309_p0 }
   0xe   :  { %1998 = vmatpush3.bf16.msra.mxu0 %v2403_v23  ;;  %2142 = vmatpush3.bf16.msra.mxu1 %v2403_v23  ;;  %v2436_v41 = vand.u32 4294901760, %v679_v32  ;;  %v146_v57 = vand.u32 4294901760, %v2447_v45  ;;  %v2467_v58 = vsub.f32 %v2353_v6, %v48_v8  ;;  %v2470_v59 = vsub.f32 %v2359_v9, %v51_v14 }
   0xf   :  { %1999 = vmatprep.subr.bf16.mxu0 %v2320_v3  ;;  %2143 = vmatprep.subr.bf16.mxu1 %v2320_v3  ;;  %v2454_v50 = vsub.f32 %v37_v30, %v2428_v38  ;;  %v2473_v60 = vsub.f32 %v2364_v10, %v54_v15  ;;  %v2477_v61 = vpack.c.bf16 %v72_v47, %v69_v46  ;;  %vm1338_vm5 = vcmask 25600  }
  0x10   :  { %v2458_v52 = vsub.f32 %v679_v32, %v2436_v41  ;;  %v133_v63 = vsub.f32 %v2430_v39, %v132_v51  ;;  %v2484_v1 = vpack.c.bf16 %v78_v53, %v75_v48  ;;  %v2486_v2 = vpack.c.bf16 %v84_v55, %v81_v54 }
  0x11   :  { %v121_v62 = vand.u32 4294901760, %v2454_v50  ;;  %v140_v4 = vsub.f32 %v2434_v40, %v139_v56  ;;  %v2490_v5 = vsub.f32 %v2447_v45, %v146_v57  ;;  %v153_v6 = vand.u32 4294901760, %v2467_v58 }
  0x12   :  { %2001 = vmatpush3.bf16.msra.mxu0 %v2417_v33  ;;  %2145 = vmatpush3.bf16.msra.mxu1 %v2417_v33  ;;  %v2764_v0 = vand.u32 4294901760, %v2458_v52  ;;  %v160_v7 = vand.u32 4294901760, %v2470_v59  ;;  %v167_v8 = vand.u32 4294901760, %v2473_v60  ;;  %v2496_v9 = vsub.f32 %v2383_v16, %v57_v24 }
  0x13   :  { %2002 = vmatprep.subr.bf16.mxu0 %v2320_v3  ;;  %2146 = vmatprep.subr.bf16.mxu1 %v2320_v3  ;;  %v2499_v10 = vsub.f32 %v2393_v18, %v60_v25  ;;  %v2501_v14 = vsub.f32 %v29_v26, %v63_v31  ;;  %v2503_v15 = vsub.f32 %v30_v28, %v66_v34  ;;  %v134_v19 = vand.u32 4294901760, %v133_v63 }
  0x14   :  { %v122_v17 = vsub.f32 %v2454_v50, %v121_v62  ;;  %v764_v16 = vsub.f32 %v2458_v52, %v2764_v0  ;;  %v2513_v20 = vsub.f32 %v31_v35, %v69_v46  ;;  %v141_v18 = vand.u32 4294901760, %v140_v4 }
  0x15   :  { %v2517_v21 = vsub.f32 %v32_v36, %v72_v47  ;;  %v2519_v22 = vsub.f32 %v33_v37, %v75_v48  ;;  %v2521_v24 = vsub.f32 %v34_v42, %v78_v53  ;;  %v154_v25 = vsub.f32 %v2467_v58, %v153_v6 }
  0x16   :  { %2004 = vmatpush3.bf16.msra.mxu0 %v2451_v49  ;;  %2148 = vmatpush3.bf16.msra.mxu1 %v2451_v49  ;;  %v161_v26 = vsub.f32 %v2470_v59, %v160_v7  ;;  %v2525_v27 = vsub.f32 %v35_v43, %v81_v54  ;;  %v2527_v28 = vsub.f32 %v36_v44, %v84_v55  ;;  %v174_v30 = vand.u32 4294901760, %v2496_v9 }
  0x17   :  { %2005 = vmatprep.subr.bf16.mxu0 %v2320_v3  ;;  %2149 = vmatprep.subr.bf16.mxu1 %v2320_v3  ;;  %v168_v29 = vsub.f32 %v2473_v60, %v167_v8  ;;  %v181_v31 = vand.u32 4294901760, %v2499_v10  ;;  %v188_v32 = vand.u32 4294901760, %v2501_v14  ;;  %v123_v34 = vand.u32 4294901760, %v122_v17 }
  0x18   :  { %v765_v35 = vand.u32 4294901760, %v764_v16  ;;  %v195_v36 = vand.u32 4294901760, %v2503_v15  ;;  %v202_v37 = vand.u32 4294901760, %v2513_v20  ;;  %v209_v42 = vand.u32 4294901760, %v2517_v21 }
  0x19   :  { %v216_v43 = vand.u32 4294901760, %v2519_v22  ;;  %v223_v44 = vand.u32 4294901760, %v2521_v24  ;;  %v2542_v46 = vpack.c.bf16 %v139_v56, %v132_v51  ;;  %v230_v47 = vand.u32 4294901760, %v2525_v27 }
  0x1a   :  { %2007 = vmatpush3.bf16.msra.mxu0 %v2477_v61  ;;  %2151 = vmatpush3.bf16.msra.mxu1 %v2477_v61  ;;  %v237_v48 = vand.u32 4294901760, %v2527_v28  ;;  %v2546_v53 = vpack.c.bf16 %v153_v6, %v146_v57  ;;  %v2548_v54 = vpack.c.bf16 %v167_v8, %v160_v7  ;;  %v2550_v55 = vpack.c.bf16 %v181_v31, %v174_v30 }
  0x1b   :  { %2008 = vmatprep.subr.bf16.mxu0 %v2320_v3  ;;  %2152 = vmatprep.subr.bf16.mxu1 %v2320_v3  ;;  %v2552_v63 = vpack.c.bf16 %v195_v36, %v188_v32  ;;  %v2554_v4 = vpack.c.bf16 %v209_v42, %v202_v37  ;;  %v2556_v17 = vpack.c.bf16 %v223_v44, %v216_v43  ;;  %v148_v56 = vand.u32 4294901760, %v2490_v5 }
  0x1c   :  { %v2015_v51 = vpack.c.bf16 %v141_v18, %v134_v19  ;;  %v155_v16 = vand.u32 4294901760, %v154_v25  ;;  %v2561_v57 = vpack.c.bf16 %v237_v48, %v230_v47  ;;  %v162_v6 = vand.u32 4294901760, %v161_v26 }
  0x1d   :  { %v169_v7 = vand.u32 4294901760, %v168_v29  ;;  %v175_v0 = vsub.f32 %v2496_v9, %v174_v30  ;;  %v182_v19 = vsub.f32 %v2499_v10, %v181_v31  ;;  %v189_v26 = vsub.f32 %v2501_v14, %v188_v32 }
  0x1e   :  { %2010 = vmatpush3.bf16.msra.mxu0 %v2484_v1  ;;  %2154 = vmatpush3.bf16.msra.mxu1 %v2484_v1  ;;  %v2018_v8 = vpack.c.bf16 %v155_v16, %v148_v56  ;;  %v196_v29 = vsub.f32 %v2503_v15, %v195_v36  ;;  %v203_v30 = vsub.f32 %v2513_v20, %v202_v37 }
  0x1f   :  { %2011 = vmatprep.subr.bf16.mxu0 %v2320_v3  ;;  %2155 = vmatprep.subr.bf16.mxu1 %v2320_v3  ;;  %v2021_v5 = vpack.c.bf16 %v169_v7, %v162_v6  ;;  %v176_v18 = vand.u32 4294901760, %v175_v0  ;;  %v183_v25 = vand.u32 4294901760, %v182_v19  ;;  %v210_v31 = vsub.f32 %v2517_v21, %v209_v42 }
  0x20   :  { %v204_v0 = vand.u32 4294901760, %v203_v30  ;;  %v217_v56 = vsub.f32 %v2519_v22, %v216_v43  ;;  %v224_v37 = vsub.f32 %v2521_v24, %v223_v44  ;;  %v231_v7 = vsub.f32 %v2525_v27, %v230_v47 }
  0x21   :  { %v211_v32 = vand.u32 4294901760, %v210_v31  ;;  %v2039_v47 = vpack.c.bf16 %v2434_v40, %v2430_v39  ;;  %v2045_v39 = vpack.c.bf16 %v2473_v60, %v2470_v59  ;;  %v2048_v40 = vpack.c.bf16 %v2499_v10, %v2496_v9 }
  0x22   :  { %2013 = vmatpush3.bf16.msra.mxu0 %v2486_v2  ;;  %2157 = vmatpush3.bf16.msra.mxu1 %v2486_v2  ;;  %v218_v16 = vand.u32 4294901760, %v217_v56  ;;  %v225_v6 = vand.u32 4294901760, %v224_v37  ;;  %v232_v44 = vand.u32 4294901760, %v231_v7  ;;  %v2057_v59 = vpack.c.bf16 %v2521_v24, %v2519_v22 }
  0x23   :  { %2014 = vmatprep.subr.bf16.mxu0 %v2320_v3  ;;  %2158 = vmatprep.subr.bf16.mxu1 %v2320_v3  ;;  %v2030_v42 = vpack.c.bf16 %v211_v32, %v204_v0  ;;  %v2060_v60 = vpack.c.bf16 %v2527_v28, %v2525_v27  ;;  %v2765_v9 = vand.u32 4294901760, %v2458_v52 }
  0x24   :  { %v2033_v43 = vpack.c.bf16 %v225_v6, %v218_v16 }
  0x25   :  { %1603 = vmatmul.mubr.f32.vlgmr.msra.gmra.mrb[0].mxu0 %v123_v34  ;;  %1813 = vmatmul.mubr.f32.vlgmr.msra.gmra.mrb[0].mxu1 %v765_v35  ;;  %v2024_v34 = vpack.c.bf16 %v183_v25, %v176_v18  ;;  %v190_v35 = vand.u32 4294901760, %v189_v26 }
  0x26   :  { %2016 = vmatpush3.bf16.msra.mxu0 %v2015_v51  ;;  %2160 = vmatpush3.bf16.msra.mxu1 %v2015_v51  ;;  %v197_v51 = vand.u32 4294901760, %v196_v29 }
  0x27   :  { %2017 = vmatprep.subr.bf16.mxu0 %v2320_v3  ;;  %2161 = vmatprep.subr.bf16.mxu1 %v2320_v3 }
  0x28   :  { %1637 = vmatprep.mubr.msk.f32.mxu0 %vm2321_vm0, %v2322_v11  ;;  %1847 = vmatprep.mubr.msk.f32.mxu1 %vm2321_vm0, %v2322_v11  ;;  %v2027_v36 = vpack.c.bf16 %v197_v51, %v190_v35 }
  0x2a   :  { %2019 = vmatpush3.bf16.msra.mxu0 %v2018_v8  ;;  %2163 = vmatpush3.bf16.msra.mxu1 %v2018_v8  ;;  %v238_v8 = vsub.f32 %v2527_v28, %v237_v48  ;;  %v2042_v48 = vpack.c.bf16 %v2467_v58, %v2447_v45  ;;  %v2051_v45 = vpack.c.bf16 %v2503_v15, %v2501_v14 }
  0x2b   :  { %2020 = vmatprep.subr.bf16.mxu0 %v2320_v3  ;;  %2164 = vmatprep.subr.bf16.mxu1 %v2320_v3  ;;  %v2054_v58 = vpack.c.bf16 %v2517_v21, %v2513_v20 }
  0x2c   :  { %v239_v19 = vand.u32 4294901760, %v238_v8 }
  0x2e   :  { %2022 = vmatpush3.bf16.msra.mxu0 %v2021_v5  ;;  %2166 = vmatpush3.bf16.msra.mxu1 %v2021_v5  ;;  %v2036_v5 = vpack.c.bf16 %v239_v19, %v232_v44 }
  0x2f   :  { %2023 = vmatprep.subr.bf16.mxu0 %v2320_v3  ;;  %2167 = vmatprep.subr.bf16.mxu1 %v2320_v3 }
  0x32   :  { %2025 = vmatpush3.bf16.msra.mxu0 %v2024_v34  ;;  %2169 = vmatpush3.bf16.msra.mxu1 %v2024_v34 }
  0x33   :  { %2026 = vmatprep.subr.bf16.mxu0 %v2320_v3  ;;  %2170 = vmatprep.subr.bf16.mxu1 %v2320_v3 }
  0x36   :  { %2028 = vmatpush3.bf16.msra.mxu0 %v2027_v36  ;;  %2172 = vmatpush3.bf16.msra.mxu1 %v2027_v36 }
  0x37   :  { %2029 = vmatprep.subr.bf16.mxu0 %v2320_v3  ;;  %2173 = vmatprep.subr.bf16.mxu1 %v2320_v3 }
  0x3a   :  { %2031 = vmatpush3.bf16.msra.mxu0 %v2030_v42  ;;  %2175 = vmatpush3.bf16.msra.mxu1 %v2030_v42 }
  0x3b   :  { %2032 = vmatprep.subr.bf16.mxu0 %v2320_v3  ;;  %2176 = vmatprep.subr.bf16.mxu1 %v2320_v3 }
  0x3e   :  { %2034 = vmatpush3.bf16.msra.mxu0 %v2033_v43  ;;  %2178 = vmatpush3.bf16.msra.mxu1 %v2033_v43 }
  0x3f   :  { %2035 = vmatprep.subr.bf16.mxu0 %v2320_v3  ;;  %2179 = vmatprep.subr.bf16.mxu1 %v2320_v3 }
  0x42   :  { %2037 = vmatpush3.bf16.msra.mxu0 %v2036_v5  ;;  %2181 = vmatpush3.bf16.msra.mxu1 %v2036_v5 }
  0x43   :  { %2038 = vmatprep.subr.bf16.mxu0 %v2320_v3  ;;  %2182 = vmatprep.subr.bf16.mxu1 %v2320_v3 }
  0x45   :  { %1638 = vmatmul.mubr.f32.vlgmr.msra.gmra.mrb[0].mxu0 %v2428_v38  ;;  %1848 = vmatmul.mubr.f32.vlgmr.msra.gmra.mrb[0].mxu1 %v2436_v41 }
  0x46   :  { %2040 = vmatpush3.bf16.msra.mxu0 %v2039_v47  ;;  %2184 = vmatpush3.bf16.msra.mxu1 %v2039_v47 }
  0x47   :  { %2041 = vmatprep.subr.bf16.mxu0 %v2320_v3  ;;  %2185 = vmatprep.subr.bf16.mxu1 %v2320_v3 }
  0x48   :  { %1672 = vmatprep.mubr.msk.f32.mxu0 %vm2321_vm0, %v2322_v11  ;;  %1882 = vmatprep.mubr.msk.f32.mxu1 %vm2321_vm0, %v2322_v11 }
  0x4a   :  { %2043 = vmatpush3.bf16.msra.mxu0 %v2042_v48  ;;  %2187 = vmatpush3.bf16.msra.mxu1 %v2042_v48 }
  0x4b   :  { %2044 = vmatprep.subr.bf16.mxu0 %v2320_v3  ;;  %2188 = vmatprep.subr.bf16.mxu1 %v2320_v3 }
  0x4e   :  { %2046 = vmatpush3.bf16.msra.mxu0 %v2045_v39  ;;  %2190 = vmatpush3.bf16.msra.mxu1 %v2045_v39 }
  0x4f   :  { %2047 = vmatprep.subr.bf16.mxu0 %v2320_v3  ;;  %2191 = vmatprep.subr.bf16.mxu1 %v2320_v3 }
  0x52   :  { %2049 = vmatpush3.bf16.msra.mxu0 %v2048_v40  ;;  %2193 = vmatpush3.bf16.msra.mxu1 %v2048_v40 }
  0x53   :  { %2050 = vmatprep.subr.bf16.mxu0 %v2320_v3  ;;  %2194 = vmatprep.subr.bf16.mxu1 %v2320_v3 }
  0x56   :  { %2052 = vmatpush3.bf16.msra.mxu0 %v2051_v45  ;;  %2196 = vmatpush3.bf16.msra.mxu1 %v2051_v45 }
  0x57   :  { %2053 = vmatprep.subr.bf16.mxu0 %v2320_v3  ;;  %2197 = vmatprep.subr.bf16.mxu1 %v2320_v3 }
  0x5a   :  { %2055 = vmatpush3.bf16.msra.mxu0 %v2054_v58  ;;  %2199 = vmatpush3.bf16.msra.mxu1 %v2054_v58 }
  0x5b   :  { %2056 = vmatprep.subr.bf16.mxu0 %v2320_v3  ;;  %2200 = vmatprep.subr.bf16.mxu1 %v2320_v3 }
  0x5e   :  { %2058 = vmatpush3.bf16.msra.mxu0 %v2057_v59  ;;  %2202 = vmatpush3.bf16.msra.mxu1 %v2057_v59 }
  0x5f   :  { %2059 = vmatprep.subr.bf16.mxu0 %v2320_v3  ;;  %2203 = vmatprep.subr.bf16.mxu1 %v2320_v3 }
  0x62   :  { %2061 = vmatpush3.bf16.msra.mxu0 %v2060_v60  ;;  %2205 = vmatpush3.bf16.msra.mxu1 %v2060_v60 }
  0x63   :  { %2062 = vmatprep.subr.bf16.mxu0 %v2320_v3  ;;  %2206 = vmatprep.subr.bf16.mxu1 %v2320_v3 }
  0x65   :  { %1673 = vmatmul.mubr.f32.vlgmr.msra.gmra.mrb[0].mxu0 %v2454_v50  ;;  %1883 = vmatmul.mubr.f32.vlgmr.msra.gmra.mrb[0].mxu1 %v2458_v52 }
  0x66   :  { %2064 = vmatpush3.bf16.msra.mxu0 %v2370_v12  ;;  %2208 = vmatpush3.bf16.msra.mxu1 %v2370_v12 }
  0x67   :  { %2065 = vmatprep.subr.bf16.mxu0 %v2320_v3  ;;  %2209 = vmatprep.subr.bf16.mxu1 %v2320_v3 }
  0x68   :  { %1707 = vmatprep.mubr.msk.f32.mxu0 %vm2321_vm0, %v2322_v11  ;;  %1917 = vmatprep.mubr.msk.f32.mxu1 %vm2321_vm0, %v2322_v11 }
  0x6a   :  { %2067 = vmatpush3.bf16.msra.mxu0 %v2376_v13  ;;  %2211 = vmatpush3.bf16.msra.mxu1 %v2376_v13 }
  0x6b   :  { %2068 = vmatprep.subr.bf16.mxu0 %v2320_v3  ;;  %2212 = vmatprep.subr.bf16.mxu1 %v2320_v3 }
  0x6e   :  { %2070 = vmatpush3.bf16.msra.mxu0 %v2403_v23  ;;  %2214 = vmatpush3.bf16.msra.mxu1 %v2403_v23 }
  0x6f   :  { %2071 = vmatprep.subr.bf16.mxu0 %v2320_v3  ;;  %2215 = vmatprep.subr.bf16.mxu1 %v2320_v3 }
  0x72   :  { %2073 = vmatpush3.bf16.msra.mxu0 %v2417_v33  ;;  %2217 = vmatpush3.bf16.msra.mxu1 %v2417_v33 }
  0x73   :  { %2074 = vmatprep.subr.bf16.mxu0 %v2320_v3  ;;  %2218 = vmatprep.subr.bf16.mxu1 %v2320_v3 }
  0x76   :  { %2076 = vmatpush3.bf16.msra.mxu0 %v2451_v49  ;;  %2220 = vmatpush3.bf16.msra.mxu1 %v2451_v49 }
  0x77   :  { %2077 = vmatprep.subr.bf16.mxu0 %v2320_v3  ;;  %2221 = vmatprep.subr.bf16.mxu1 %v2320_v3 }
  0x7a   :  { %2079 = vmatpush3.bf16.msra.mxu0 %v2477_v61  ;;  %2223 = vmatpush3.bf16.msra.mxu1 %v2477_v61 }
  0x7b   :  { %2080 = vmatprep.subr.bf16.mxu0 %v2320_v3  ;;  %2224 = vmatprep.subr.bf16.mxu1 %v2320_v3 }
  0x7e   :  { %2082 = vmatpush3.bf16.msra.mxu0 %v2484_v1  ;;  %2226 = vmatpush3.bf16.msra.mxu1 %v2484_v1 }
  0x7f   :  { %2083 = vmatprep.subr.bf16.mxu0 %v2320_v3  ;;  %2227 = vmatprep.subr.bf16.mxu1 %v2320_v3 }
  0x82   :  { %2085 = vmatpush3.bf16.msra.mxu0 %v2486_v2  ;;  %2229 = vmatpush3.bf16.msra.mxu1 %v2486_v2 }
  0x83   :  { %2086 = vmatprep.subr.bf16.mxu0 %v2320_v3  ;;  %2230 = vmatprep.subr.bf16.mxu1 %v2320_v3 }
  0x85   :  { %1708 = vmatmul.mubr.f32.vlgmr.msra.gmra.mrb[0].mxu0 %v121_v62  ;;  %1918 = vmatmul.mubr.f32.vlgmr.msra.gmra.mrb[0].mxu1 %v2765_v9 }
  0x86   :  { %2088 = vmatpush3.bf16.msra.mxu0 %v2542_v46  ;;  %2232 = vmatpush3.bf16.msra.mxu1 %v2542_v46 }
  0x87   :  { %2089 = vmatprep.subr.bf16.mxu0 %v2320_v3  ;;  %2233 = vmatprep.subr.bf16.mxu1 %v2320_v3 }
  0x88   :  { %1742 = vmatprep.mubr.msk.f32.mxu0 %vm2321_vm0, %v2322_v11  ;;  %1952 = vmatprep.mubr.msk.f32.mxu1 %vm2321_vm0, %v2322_v11 }
  0x8a   :  { %2091 = vmatpush3.bf16.msra.mxu0 %v2546_v53  ;;  %2235 = vmatpush3.bf16.msra.mxu1 %v2546_v53 }
  0x8b   :  { %2092 = vmatprep.subr.bf16.mxu0 %v2320_v3  ;;  %2236 = vmatprep.subr.bf16.mxu1 %v2320_v3 }
  0x8e   :  { %2094 = vmatpush3.bf16.msra.mxu0 %v2548_v54  ;;  %2238 = vmatpush3.bf16.msra.mxu1 %v2548_v54 }
  0x8f   :  { %2095 = vmatprep.subr.bf16.mxu0 %v2320_v3  ;;  %2239 = vmatprep.subr.bf16.mxu1 %v2320_v3 }
  0x92   :  { %2097 = vmatpush3.bf16.msra.mxu0 %v2550_v55  ;;  %2241 = vmatpush3.bf16.msra.mxu1 %v2550_v55 }
  0x93   :  { %2098 = vmatprep.subr.bf16.mxu0 %v2320_v3  ;;  %2242 = vmatprep.subr.bf16.mxu1 %v2320_v3 }
  0x96   :  { %2100 = vmatpush3.bf16.msra.mxu0 %v2552_v63  ;;  %2244 = vmatpush3.bf16.msra.mxu1 %v2552_v63 }
  0x97   :  { %2101 = vmatprep.subr.bf16.mxu0 %v2320_v3  ;;  %2245 = vmatprep.subr.bf16.mxu1 %v2320_v3 }
  0x9a   :  { %2103 = vmatpush3.bf16.msra.mxu0 %v2554_v4  ;;  %2247 = vmatpush3.bf16.msra.mxu1 %v2554_v4 }
  0x9b   :  { %2104 = vmatprep.subr.bf16.mxu0 %v2320_v3  ;;  %2248 = vmatprep.subr.bf16.mxu1 %v2320_v3 }
  0x9e   :  { %2106 = vmatpush3.bf16.msra.mxu0 %v2556_v17  ;;  %2250 = vmatpush3.bf16.msra.mxu1 %v2556_v17 }
  0x9f   :  { %2107 = vmatprep.subr.bf16.mxu0 %v2320_v3  ;;  %2251 = vmatprep.subr.bf16.mxu1 %v2320_v3 }
  0xa2   :  { %2109 = vmatpush3.bf16.msra.mxu0 %v2561_v57  ;;  %2253 = vmatpush3.bf16.msra.mxu1 %v2561_v57 }
  0xa3   :  { %2110 = vmatprep.subr.bf16.mxu0 %v2320_v3  ;;  %2254 = vmatprep.subr.bf16.mxu1 %v2320_v3 }
  0xa5   :  { %1743 = vmatmul.mubr.f32.vlgmr.msra.gmra.mrb[0].mxu0 %v2428_v38  ;;  %1953 = vmatmul.mubr.f32.vlgmr.msra.gmra.mrb[0].mxu1 %v2436_v41 }
  0xa6   :  { %2112 = vmatpush3.bf16.msra.mxu0 %v2370_v12  ;;  %2256 = vmatpush3.bf16.msra.mxu1 %v2370_v12 }
  0xa7   :  { %2113 = vmatprep.subr.bf16.mxu0 %v2320_v3  ;;  %2257 = vmatprep.subr.bf16.mxu1 %v2320_v3 }
  0xa8   :  { %1777 = vmatprep.mubr.msk.f32.mxu0 %vm2321_vm0, %v2322_v11  ;;  %1987 = vmatprep.mubr.msk.f32.mxu1 %vm2321_vm0, %v2322_v11 }
  0xaa   :  { %2115 = vmatpush3.bf16.msra.mxu0 %v2376_v13  ;;  %2259 = vmatpush3.bf16.msra.mxu1 %v2376_v13 }
  0xab   :  { %2116 = vmatprep.subr.bf16.mxu0 %v2320_v3  ;;  %2260 = vmatprep.subr.bf16.mxu1 %v2320_v3 }
  0xae   :  { %2118 = vmatpush3.bf16.msra.mxu0 %v2403_v23  ;;  %2262 = vmatpush3.bf16.msra.mxu1 %v2403_v23 }
  0xaf   :  { %2119 = vmatprep.subr.bf16.mxu0 %v2320_v3  ;;  %2263 = vmatprep.subr.bf16.mxu1 %v2320_v3 }
  0xb2   :  { %2121 = vmatpush3.bf16.msra.mxu0 %v2417_v33  ;;  %2265 = vmatpush3.bf16.msra.mxu1 %v2417_v33 }
  0xb3   :  { %2122 = vmatprep.subr.bf16.mxu0 %v2320_v3  ;;  %2266 = vmatprep.subr.bf16.mxu1 %v2320_v3 }
  0xb6   :  { %2124 = vmatpush3.bf16.msra.mxu0 %v2451_v49  ;;  %2268 = vmatpush3.bf16.msra.mxu1 %v2451_v49 }
  0xb7   :  { %2125 = vmatprep.subr.bf16.mxu0 %v2320_v3  ;;  %2269 = vmatprep.subr.bf16.mxu1 %v2320_v3 }
  0xba   :  { %2127 = vmatpush3.bf16.msra.mxu0 %v2477_v61  ;;  %2271 = vmatpush3.bf16.msra.mxu1 %v2477_v61 }
  0xbb   :  { %2128 = vmatprep.subr.bf16.mxu0 %v2320_v3  ;;  %2272 = vmatprep.subr.bf16.mxu1 %v2320_v3 }
  0xbe   :  { %2130 = vmatpush3.bf16.msra.mxu0 %v2484_v1  ;;  %2274 = vmatpush3.bf16.msra.mxu1 %v2484_v1 }
  0xbf   :  { %2131 = vmatprep.subr.bf16.mxu0 %v2320_v3  ;;  %2275 = vmatprep.subr.bf16.mxu1 %v2320_v3 }
  0xc2   :  { %2133 = vmatpush3.bf16.msra.mxu0 %v2486_v2  ;;  %2277 = vmatpush3.bf16.msra.mxu1 %v2486_v2 }
  0xc5   :  { %1778 = vmatmul.mubr.f32.vlgmr.msra.gmra.mrb[0].mxu0 %v2428_v38  ;;  %1988 = vmatmul.mubr.f32.vlgmr.msra.gmra.mrb[0].mxu1 %v2436_v41 }
 0x198   :  { %v675_v11 = vpop.f32.mrb[0].mxu0  ;;  %v1317_v12 = vpop.f32.mrb[0].mxu1 }
 0x199   :  { %2304 = vrsqrt.f32 %v675_v11  ;;  %v1779_v13 = vpop.f32.mrb[1].mxu0  ;;  %v1989_v23 = vpop.f32.mrb[1].mxu1  ;;  %vm1323_vm1 = vcmp.eq.f32.partialorder %v675_v11, inf  ;;  %v1326_v52 = vand.u32 2147483648, %v675_v11  ;;  %vm1325_vm2 = vcmp.eq.f32.partialorder %v675_v11, 0.0 }
 0x19a   :  { %2306 = vrsqrt.f32 %v1317_v12  ;;  %vm1330_vm3 = vcmp.eq.f32.partialorder %v1317_v12, inf  ;;  %v1333_v62 = vand.u32 2147483648, %v1317_v12  ;;  %vm1332_vm4 = vcmp.eq.f32.partialorder %v1317_v12, 0.0 }
 0x1a3   :  { %v2305_v33 = vpop.eup %2304 }
 0x1a4   :  { %v2307_v49 = vpop.eup %2306  ;;  %v1322_v50 = vmul.f32 %v2305_v33, %v675_v11 }
 0x1a5   :  { %v1329_v3 = vmul.f32 %v2307_v49, %v1317_v12 }
 0x1a6   :  { %v1324_v61 = vsel %vm1323_vm1, %v675_v11, %v1322_v50 }
 0x1a7   :  { %v1327_v1 = vsel %vm1325_vm2, %v1326_v52, %v1324_v61  ;;  %v1331_v38 = vsel %vm1330_vm3, %v1317_v12, %v1329_v3 }
 0x1a8   :  { %v1334_v41 = vsel %vm1332_vm4, %v1333_v62, %v1331_v38 }
 0x1a9   :  { %v1335_v2 = vsub.f32 %v1327_v1, %v1334_v41 }
 0x1ab   :  { %v1336_v10 = vadd.f32 1.0, %v1335_v2 }
 0x1ad   :  { %v1337_v14 = vmax.f32 %v1336_v10, 0.0 }
 0x1af   :  { %v1339_v15 = vsel %vm1338_vm5, %v1337_v14, 0.0 }
 0x1b0   :  { %1340 = vadd.xlane.f32.xlu0 %v1339_v15 }
 0x23d   :  { %v1341_v20 = vpop.xlane.xlu0 %1340 }
 0x23e   :  { %v1342_v21 = vrot.slane %v1341_v20, 4 }
 0x240   :  { %v1343_v22 = vadd.f32 %v1342_v21, %v1341_v20 }
 0x242   :  { %v1344_v24 = vrot.slane %v1343_v22, 2 }
 0x244   :  { %v1345_v27 = vadd.f32 %v1344_v24, %v1343_v22 }
 0x246   :  { %v1346_v28 = vrot.slane %v1345_v27, 1 }
 0x248   :  { %v1347_v46 = vadd.f32 %v1346_v28, %v1345_v27 }
 0x24a   :  { %2298 = vpush %v1347_v46 }
 0x27b   :  { %s2299_s1 = spop %2298 }
 0x27c   :  { %1350 = sst [smem:[#allocation2]] %s2299_s1 }
 0x27d   :  { %2317 = shalt.err (!%p2314_p2)
}
 0x27e   :  { %s2323_s25 = smov [#allocation2]  }
 0x27f   :  { %1358 = dma.smem_to_hbm %s2323_s25, 16, %s2763_s2, [#allocation3]  }
 0x280   :  { %2318 = dma.done.wait [#allocation3], 16  }
 0x281   :  { %2319 = vsyncadd [#allocation3], 4294967280 }
 0x282   :  { %1362 = sfence }
 0x283   :  { %1363 = vsyncpa [#allocation3], 1 }

</bundles_post_ra>
